<compile_context>
chip_gen: v6e
topology: v6e:2x2x1
jax: 0.10.0
libtpu: 0.0.40
codegen_flags: <defaults>
</compile_context>

<pallas_src>
import functools

import jax
import jax.numpy as jnp
from jax.experimental import pallas as pl
from jax.experimental.pallas import tpu as pltpu


def _round_up(x, n):
    return (x + n - 1) // n * n


def fnn_lm_kernel(x_ref, w1t_ref, b1_ref, w23_ref, out_ref):
    # x_ref:   [bt, Dp]        bf16   (resident across class tiles)
    # w1t_ref: [Dp, Hp]        bf16   (resident, small)
    # b1_ref:  [1,  Hp]        f32    (resident)
    # w23_ref: [Dp+Hp, ct]     bf16   (class tile of fused [W3^T ; W2^T])
    # out_ref: [bt, ct]        f32
    x = x_ref[...]

    # Stage 1: hidden activations, f32 accumulate, tanh/bias in f32 (VPU/EUP).
    h = jnp.dot(x, w1t_ref[...], preferred_element_type=jnp.float32)
    y1 = jnp.tanh(b1_ref[...] + h)

    # Stage 2: ONE fused MXU op for this class tile:
    #   out = [x | y1] @ [[W3^T_tile], [W2^T_tile]]
    xy1 = jnp.concatenate([x, y1.astype(x.dtype)], axis=-1)  # [bt, Dp+Hp]
    out_ref[...] = jnp.dot(
        xy1, w23_ref[...], preferred_element_type=jnp.float32
    ).astype(out_ref.dtype)


def prepare_fnn_lm_params(C_emb, w1, b1, w2, w3, compute_dtype=jnp.bfloat16):
    """One-time weight preparation (NOT in the per-step hot path).

    PyTorch layouts: w1 [H, D], w2 [n_class, H], w3 [n_class, D], b1 [H].
    Returns lane-dense, pre-transposed, fused operands:
      c_emb  [n_class, m]   compute_dtype
      w1t_p  [Dp, Hp]       compute_dtype
      b1_p   [1, Hp]        f32
      w23_p  [Dp+Hp, Cp]    compute_dtype   (rows 0..Dp = W3^T, Dp..Dp+Hp = W2^T)
    """
    H, D = w1.shape
    n_class = w2.shape[0]
    assert w3.shape == (n_class, D) and b1.shape == (H,)

    Dp = _round_up(D, 128)
    Hp = _round_up(H, 128)
    # class tile: 256-wide on realistic vocabs, otherwise pad to 128.
    ct = 256 if n_class > 256 else _round_up(n_class, 128)
    Cp = _round_up(n_class, ct)

    w1t_p = jnp.pad(w1.T.astype(compute_dtype), ((0, Dp - D), (0, Hp - H)))
    b1_p = jnp.pad(b1.astype(jnp.float32), (0, Hp - H)).reshape(1, Hp)
    w3t_p = jnp.pad(w3.T.astype(compute_dtype), ((0, Dp - D), (0, Cp - n_class)))
    w2t_p = jnp.pad(w2.T.astype(compute_dtype), ((0, Hp - H), (0, Cp - n_class)))
    w23_p = jnp.concatenate([w3t_p, w2t_p], axis=0)  # [Dp+Hp, Cp]

    c_emb = C_emb.astype(compute_dtype)
    return c_emb, w1t_p, b1_p, w23_p


@functools.partial(jax.jit, static_argnames=("n_step", "m", "n_class"))
def fnn_lm_forward(X, c_emb, w1t_p, b1_p, w23_p, *, n_step, m, n_class):
    """X: [B, n_step] int32 token ids.  Returns f32 logits [B, n_class]."""
    B = X.shape[0]
    D = n_step * m
    Dp, Hp = w1t_p.shape
    Cp = w23_p.shape[1]
    assert w23_p.shape[0] == Dp + Hp

    # Embedding gather + flatten (plain-JAX glue), then pad lane/sublane dims.
    x_emb = c_emb[X].reshape(B, D)

    # Batch tiling: full block for small B, 128-row tiles otherwise.
    if B <= 128:
        Bp = _round_up(B, 8)
        bt = Bp
    else:
        bt = 128
        Bp = _round_up(B, bt)
    nb = Bp // bt

    ct = min(Cp, 256)  # consistent with prepare_fnn_lm_params
    nc = Cp // ct

    x_pad = jnp.pad(x_emb, ((0, Bp - B), (0, Dp - D)))

    out = pl.pallas_call(
        fnn_lm_kernel,
        out_shape=jax.ShapeDtypeStruct((Bp, Cp), jnp.float32),
        grid=(nb, nc),
        in_specs=[
            pl.BlockSpec((bt, Dp), lambda i, j: (i, 0)),        # x: per batch tile
            pl.BlockSpec((Dp, Hp), lambda i, j: (0, 0)),        # W1^T: resident
            pl.BlockSpec((1, Hp), lambda i, j: (0, 0)),         # b1: resident
            pl.BlockSpec((Dp + Hp, ct), lambda i, j: (0, j)),   # fused W23: per class tile
        ],
        out_specs=pl.BlockSpec((bt, ct), lambda i, j: (i, j)),
        compiler_params=pltpu.CompilerParams(
            dimension_semantics=("parallel", "parallel"),
            vmem_limit_bytes=48 * 1024 * 1024,
        ),
    )(x_pad, w1t_p, b1_p, w23_p)

    return out[:B, :n_class]


def reference_forward(X, C_emb, w1, b1, w2, w3, n_step, m):
    B = X.shape[0]
    x = C_emb[X].reshape(B, n_step * m).astype(jnp.float32)
    y1 = jnp.tanh(b1 + x @ w1.T)
    return x @ w3.T + y1 @ w2.T


if __name__ == "__main__":
    # Small, module-consistent shapes.
    n_class = 32
    m = 8
    n_step = 4
    n_hidden = 32
    batch = 8
    D = n_step * m

    key = jax.random.PRNGKey(0)
    k_emb, k_w1, k_w2, k_w3, k_x = jax.random.split(key, 5)

    # Deterministic synthetic parameters (PyTorch-layout shapes).
    C_emb = jax.random.normal(k_emb, (n_class, m), dtype=jnp.float32) * 0.1
    w1 = jax.random.normal(k_w1, (n_hidden, D), dtype=jnp.float32) * 0.1
    b1 = jnp.ones((n_hidden,), dtype=jnp.float32)   # nn.Parameter(torch.ones(n_hidden))
    w2 = jax.random.normal(k_w2, (n_class, n_hidden), dtype=jnp.float32) * 0.1
    w3 = jax.random.normal(k_w3, (n_class, D), dtype=jnp.float32) * 0.1

    # Input token indices: [batch, n_step]
    X = jax.random.randint(k_x, (batch, n_step), 0, n_class, dtype=jnp.int32)

    # One-time weight prep (out of the hot path).
    c_emb, w1t_p, b1_p, w23_p = prepare_fnn_lm_params(C_emb, w1, b1, w2, w3)

    out = fnn_lm_forward(
        X, c_emb, w1t_p, b1_p, w23_p, n_step=n_step, m=m, n_class=n_class
    )
    out = jax.block_until_ready(out)

    ref = reference_forward(X, C_emb, w1, b1, w2, w3, n_step, m)
    assert out.shape == (batch, n_class)
    # bf16 MXU inputs with f32 accumulation -> ~1e-2 tolerance vs f32 reference.
    assert jnp.allclose(out, ref, atol=2e-2, rtol=2e-2), "mismatch vs reference"

    print("KERNEL_OK")
</pallas_src>

<mosaic_0001>
module attributes {stable_mosaic.version = 11 : i64} {
  func.func @fnn_lm_kernel(%arg0: i32, %arg1: i32, %arg2: memref<8x128xbf16, #tpu.memory_space<vmem>>, %arg3: memref<128x128xbf16, #tpu.memory_space<vmem>>, %arg4: memref<1x128xf32, #tpu.memory_space<vmem>>, %arg5: memref<256x128xbf16, #tpu.memory_space<vmem>>, %arg6: memref<8x128xf32, #tpu.memory_space<vmem>>) attributes {dimension_semantics = [#tpu.dimension_semantics<parallel>, #tpu.dimension_semantics<parallel>], iteration_bounds = array<i64: 1, 1>, scalar_prefetch = 0 : i64, scratch_operands = 0 : i64, tpu.core_type = #tpu.core_type<tc>, window_params = [{transform_indices = @transform_0, window_bounds = array<i64: 8, 128>}, {pipeline_mode = #tpu.pipeline_mode<synchronous>, transform_indices = @transform_1, window_bounds = array<i64: 128, 128>}, {pipeline_mode = #tpu.pipeline_mode<synchronous>, transform_indices = @transform_2, window_bounds = array<i64: 1, 128>}, {transform_indices = @transform_3, window_bounds = array<i64: 256, 128>}, {transform_indices = @transform_4, window_bounds = array<i64: 8, 128>}]} {
    %c0 = arith.constant 0 : index
    %c0_0 = arith.constant 0 : index
    %0 = vector.load %arg2[%c0, %c0_0] : memref<8x128xbf16, #tpu.memory_space<vmem>>, vector<8x128xbf16>
    %c0_1 = arith.constant 0 : index
    %c0_2 = arith.constant 0 : index
    %1 = vector.load %arg3[%c0_1, %c0_2] : memref<128x128xbf16, #tpu.memory_space<vmem>>, vector<128x128xbf16>
    %cst = arith.constant dense<0.000000e+00> : vector<8x128xf32>
    %2 = tpu.matmul %0, %1, %cst {dimension_numbers = #tpu.dot_dimension_numbers<[1], [0], [0], [1], [0, 0, 1, 1], [], []>} : vector<8x128xbf16>, vector<128x128xbf16>, vector<8x128xf32> -> vector<8x128xf32>
    %c0_3 = arith.constant 0 : index
    %c0_4 = arith.constant 0 : index
    %3 = vector.load %arg4[%c0_3, %c0_4] : memref<1x128xf32, #tpu.memory_space<vmem>>, vector<1x128xf32>
    %4 = vector.broadcast %3 : vector<1x128xf32> to vector<8x128xf32>
    %5 = arith.addf %4, %2 : vector<8x128xf32>
    %6 = math.tanh %5 : vector<8x128xf32>
    %7 = arith.truncf %6 : vector<8x128xf32> to vector<8x128xbf16>
    %8 = tpu.concatenate %0, %7 in 1 : vector<8x128xbf16>, vector<8x128xbf16> -> vector<8x256xbf16>
    %c0_5 = arith.constant 0 : index
    %c0_6 = arith.constant 0 : index
    %9 = vector.load %arg5[%c0_5, %c0_6] : memref<256x128xbf16, #tpu.memory_space<vmem>>, vector<256x128xbf16>
    %cst_7 = arith.constant dense<0.000000e+00> : vector<8x128xf32>
    %10 = tpu.matmul %8, %9, %cst_7 {dimension_numbers = #tpu.dot_dimension_numbers<[1], [0], [0], [1], [0, 0, 1, 1], [], []>} : vector<8x256xbf16>, vector<256x128xbf16>, vector<8x128xf32> -> vector<8x128xf32>
    %c0_8 = arith.constant 0 : index
    %c0_9 = arith.constant 0 : index
    %11 = vector.load %arg6[%c0_8, %c0_9] : memref<8x128xf32, #tpu.memory_space<vmem>>, vector<8x128xf32>
    tpu.vector_store %arg6[%c0_8, %c0_9], %10 {strides = array<i32>} : memref<8x128xf32, #tpu.memory_space<vmem>>, vector<8x128xf32>,
    return
  }
  func.func @transform_0(%arg0: i32, %arg1: i32) -> (i32, i32) {
    %c0_i32 = arith.constant 0 : i32
    %c0_i32_0 = arith.constant 0 : i32
    return %arg0, %c0_i32 : i32, i32
  }
  func.func @transform_1(%arg0: i32, %arg1: i32) -> (i32, i32) {
    %c0_i32 = arith.constant 0 : i32
    %c0_i32_0 = arith.constant 0 : i32
    %c0_i32_1 = arith.constant 0 : i32
    return %c0_i32, %c0_i32_0 : i32, i32
  }
  func.func @transform_2(%arg0: i32, %arg1: i32) -> (i32, i32) {
    %c0_i32 = arith.constant 0 : i32
    %c0_i32_0 = arith.constant 0 : i32
    %c0_i32_1 = arith.constant 0 : i32
    return %c0_i32, %c0_i32_0 : i32, i32
  }
  func.func @transform_3(%arg0: i32, %arg1: i32) -> (i32, i32) {
    %c0_i32 = arith.constant 0 : i32
    %c0_i32_0 = arith.constant 0 : i32
    return %c0_i32, %arg1 : i32, i32
  }
  func.func @transform_4(%arg0: i32, %arg1: i32) -> (i32, i32) {
    %c0_i32 = arith.constant 0 : i32
    return %arg0, %arg1 : i32, i32
  }
}

</mosaic_0001>

<bundles_post_ra>
// kernel: fnn_lm_forward.1
= control target key start
LH: loop header
LB: loop body
LE: loop exit
PB: predicated region body
PF: predicated region fallthrough
CT: control target
= control target key end

     0   :  { %v444_v1 = vmov 0.0   ;;  %vm445_vm0 = vmmov 0   ;;  %s553_s0 = inlined_call_operand.vmem [shape: bf16[8,128], index: 0, kind: input, shape index: {}]   ;;  %s554_s1 = inlined_call_operand.vmem [shape: bf16[128,128], index: 1, kind: input, shape index: {}]   ;;  %s555_s2 = inlined_call_operand.vmem [shape: f32[1,128], index: 2, kind: input, shape index: {}]   ;;  %s556_s3 = inlined_call_operand.vmem [shape: bf16[256,128], index: 3, kind: input, shape index: {}]   ;;  %s557_s4 = inlined_call_operand.hbm [shape: f32[8,128], index: 4, kind: output, shape index: {}]  }
   0x1   :  { %v396_v0 = vld [vmem:[%s554_s1 + $0x38] sm:$0xff]   ;;  %373 = vmatprep.subr.bf16.mxu0 %v444_v1  ;;  %v397_v2 = vld [vmem:[%s554_s1 + $0x30] sm:$0xff]   ;;  %389 = vmatprep.mubr.msk.bf16.mxu0 %vm445_vm0, %v444_v1  ;;  %v398_v3 = vld [vmem:[%s554_s1 + $0x28] sm:$0xff]  }
   0x2   :  { %374 = vmatpush3.bf16.msra.mxu0 %v396_v0  ;;  %v399_v4 = vld [vmem:[%s554_s1 + $0x20] sm:$0xff]   ;;  %v404_v5 = vld [vmem:[%s556_s3 + $0x78] sm:$0xff]   ;;  %v406_v7 = vld [vmem:[%s556_s3 + $0x70] sm:$0xff]  }
   0x3   :  { %375 = vmatprep.subr.bf16.mxu0 %v444_v1  ;;  %v405_v6 = vld [vmem:[%s556_s3 + $0x38] sm:$0xff]   ;;  %351 = vmatprep.subr.bf16.mxu1 %v404_v5  ;;  %v407_v9 = vld [vmem:[%s556_s3 + $0x30] sm:$0xff]   ;;  %v408_v10 = vld [vmem:[%s556_s3 + $0x68] sm:$0xff]  }
   0x4   :  { %v400_v8 = vld [vmem:[%s554_s1 + $0x18] sm:$0xff]   ;;  %352 = vmatpush3.bf16.msra.mxu1 %v405_v6  ;;  %v409_v11 = vld [vmem:[%s556_s3 + $0x28] sm:$0xff]   ;;  %v401_v12 = vld [vmem:[%s554_s1 + $0x10] sm:$0xff]  }
   0x5   :  { %353 = vmatprep.subr.bf16.mxu1 %v406_v7 }
   0x6   :  { %376 = vmatpush3.bf16.msra.mxu0 %v397_v2 }
   0x7   :  { %377 = vmatprep.subr.bf16.mxu0 %v444_v1 }
   0x8   :  { %354 = vmatpush3.bf16.msra.mxu1 %v407_v9 }
   0x9   :  { %355 = vmatprep.subr.bf16.mxu1 %v408_v10 }
   0xa   :  { %378 = vmatpush3.bf16.msra.mxu0 %v398_v3 }
   0xb   :  { %379 = vmatprep.subr.bf16.mxu0 %v444_v1 }
   0xc   :  { %356 = vmatpush3.bf16.msra.mxu1 %v409_v11 }
   0xe   :  { %380 = vmatpush3.bf16.msra.mxu0 %v399_v4 }
   0xf   :  { %381 = vmatprep.subr.bf16.mxu0 %v444_v1 }
  0x12   :  { %382 = vmatpush3.bf16.msra.mxu0 %v400_v8 }
  0x13   :  { %383 = vmatprep.subr.bf16.mxu0 %v444_v1 }
  0x14   :  { %9 = vsyncpa [#allocation3], 0  ;;  %v402_v13 = vld [vmem:[%s554_s1 + $0x8] sm:$0xff]   ;;  %v403_v14 = vld [vmem:[%s554_s1] sm:$0xff]   ;;  %s446_s13 = smov [#allocation2]  }
  0x15   :  { %v19_v15 = vld [vmem:[%s553_s0] sm:$0xf]  ;;  %v412_v18 = vld [vmem:[%s556_s3 + $0x58] sm:$0xff]   ;;  %v414_v20 = vld [vmem:[%s556_s3 + $0x50] sm:$0xff]   ;;  %s309_s14 = sshll.u32 %s446_s13, 4  ;;  %s310_s14 = int_to_ptr.vmem [resolvable:$true] %s309_s14 }
  0x16   :  { %384 = vmatpush3.bf16.msra.mxu0 %v401_v12  ;;  %v410_v16 = vld [vmem:[%s556_s3 + $0x60] sm:$0xff]   ;;  %v413_v19 = vld [vmem:[%s556_s3 + $0x18] sm:$0xff]   ;;  %v415_v21 = vld [vmem:[%s556_s3 + $0x10] sm:$0xff]   ;;  %p427_p1 = scmp.lt.s32.totalorder %s310_s14, %s310_s14 }
  0x17   :  { %385 = vmatprep.subr.bf16.mxu0 %v444_v1  ;;  %v411_v17 = vld [vmem:[%s556_s3 + $0x20] sm:$0xff]   ;;  %357 = vmatprep.subr.bf16.mxu1 %v410_v16  ;;  %v416_v22 = vld [vmem:[%s556_s3 + $0x48] sm:$0xff]  }
  0x18   :  { %358 = vmatpush3.bf16.msra.mxu1 %v411_v17  ;;  %v417_v23 = vld [vmem:[%s556_s3 + $0x8] sm:$0xff]   ;;  %v418_v24 = vld [vmem:[%s556_s3 + $0x40] sm:$0xff]  }
  0x19   :  { %359 = vmatprep.subr.bf16.mxu1 %v412_v18  ;;  %v419_v25 = vld [vmem:[%s556_s3] sm:$0xff]  }
  0x1a   :  { %386 = vmatpush3.bf16.msra.mxu0 %v402_v13  ;;  %v325_v26 = vld [vmem:[%s555_s2] ss:$0 sm:$0xff]  ;;  %s422_s2 = scalar_lea.vmem %s310_s14, 128 }
  0x1b   :  { %387 = vmatprep.subr.bf16.mxu0 %v444_v1  ;;  %p423_p0 = scmp.ne.s32.totalorder %s310_s14, %s422_s2  ;;  %p428_p2 = scmp.lt.s32.totalorder %s422_s2, %s422_s2 }
  0x1c   :  { %360 = vmatpush3.bf16.msra.mxu1 %v413_v19 }
  0x1d   :  { %361 = vmatprep.subr.bf16.mxu1 %v414_v20  ;;  %p429_p3 = por %p428_p2, %p427_p1 }
  0x1e   :  { %388 = vmatpush3.bf16.msra.mxu0 %v403_v14 }
  0x1f   :  { %p430_p4 = pnand %p429_p3, %p423_p0 }
  0x20   :  { %362 = vmatpush3.bf16.msra.mxu1 %v415_v21 }
  0x21   :  { %390 = vmatmul.mubr.bf16.vlgmr.msra.gmra.mxu0 %v19_v15  ;;  %363 = vmatprep.subr.bf16.mxu1 %v416_v22 }
  0x24   :  { %364 = vmatpush3.bf16.msra.mxu1 %v417_v23 }
  0x25   :  { %365 = vmatprep.subr.bf16.mxu1 %v418_v24 }
  0x28   :  { %366 = vmatpush3.bf16.msra.mxu1 %v419_v25 }
  0xe1   :  { %v118_v27 = vpop.f32.mrf.mxu0 }
  0xe2   :  { %v131_v28 = vadd.f32 %v325_v26, %v118_v27 }
  0xe3   :  { %v391_v29 = vpop.f32.mrf.mxu0 }
  0xe4   :  { %420 = vtanh.f32 %v131_v28 }
  0xe5   :  { %v121_v30 = vpop.f32.mrf.mxu0 }
  0xe7   :  { %v392_v31 = vpop.f32.mrf.mxu0 }
  0xf1   :  { %v421_v32 = vpop.eup %420 }
  0xf2   :  { %v133_v33 = vpack.c.bf16 %v421_v32, %v421_v32 }
  0xf4   :  { %294 = vmatprep.mubr.bf16.mxu1 %v133_v33 }
  0xf5   :  { %295 = vmatmul.mubr.bf16.vlgmr.msra.gmra.mxu1 %v19_v15 }
 0x1b5   :  { %v367_v34 = vpop.f32.mrf.mxu1 }
 0x1b7   :  { %v368_v35 = vpop.f32.mrf.mxu1 }
 0x1b8   :  { %v369_v36 = vadd.f32 %v368_v35, %v367_v34 }
 0x1b9   :  { %v370_v37 = vpop.f32.mrf.mxu1 }
 0x1ba   :  { %302 = vst [vmem:[#allocation2] sm:$0xff] %v369_v36 }
 0x1bb   :  { %v371_v38 = vpop.f32.mrf.mxu1 }
 0x1bc   :  { %433 = shalt.err (!%p430_p4)
}
 0x1bd   :  { %312 = dma.vmem_to_hbm [thread:$0]  %s310_s14, 128, %s557_s4, [#allocation3]  }
 0x1be   :  { %442 = dma.done.wait [#allocation3], 128  }
 0x1bf   :  { %443 = vsyncadd [#allocation3], 4294967168 }
 0x1c0   :  { %316 = vsyncpa [#allocation3], 1 }

</bundles_post_ra>
